<compile_context>
chip_gen: v7x
topology: tpu7x:2x2x1
jax: 0.10.0
libtpu: 0.0.40
codegen_flags: <defaults>
</compile_context>

<pallas_src>
import math
import numpy as np
import jax
import jax.numpy as jnp
from jax.experimental import pallas as pl
from jax.experimental.pallas import tpu as pltpu

# ----------------------------- configuration --------------------------------
BATCH       = 2
IN_FEATURES = 17                 # scaled from 177 (input zero-padded to prod(IN_MODES_1))
IN_MODES_1  = (2, 2, 2, 2, 2)    # scaled from (3, 4, 8, 4, 8)       prod = 32 >= 17
OUT_MODES_1 = (2, 2, 4, 2, 2)    # scaled from (10, 20, 50, 20, 10)  prod = 64
IN_MODES_2  = OUT_MODES_1        # must match ip1 output modes
OUT_MODES_2 = (1, 2, 5, 1, 1)    # same as original, prod = 10 classes
TT_RANK     = 3

NUM_CLASSES = math.prod(OUT_MODES_2)   # 10
M1          = math.prod(IN_MODES_1)    # 32
HIDDEN      = math.prod(OUT_MODES_1)   # 64
LANE        = 128                      # lane-dense padded logit width
BATCH_PAD   = 8                        # sublane-dense padded batch (f32 output tile)

# ----------------------------- fused Pallas kernel ----------------------------

def _fused_forward_kernel(x_ref, w_ref, o_ref):
    # x_ref: (BATCH_PAD, M1)   bf16  zero-padded input (rows 2..7 are zeros)
    # w_ref: (M1, LANE)        bf16  folded dense weight W1 @ W2, zero-padded 10 -> 128 lanes
    # o_ref: (BATCH_PAD, LANE) f32   log-probabilities (padded lanes/rows discarded outside)
    logits = jnp.dot(x_ref[...], w_ref[...],
                     preferred_element_type=jnp.float32)          # (BATCH_PAD, LANE) f32

    # Masked, lane-dense log-softmax over the (padded) class axis, all in f32.
    # NOTE: -1e30 sentinel is only safe in f32; keep epilogue f32 (v5e VPU/EUP have no bf16).
    col = jax.lax.broadcasted_iota(jnp.int32, logits.shape, 1)
    masked = jnp.where(col < NUM_CLASSES, logits, jnp.float32(-1e30))
    m = jnp.max(masked, axis=-1, keepdims=True)
    s = masked - m
    lse = jnp.log(jnp.sum(jnp.exp(s), axis=-1, keepdims=True))
    o_ref[...] = s - lse                       # full (8,128) unmasked store; sliced outside


_VMEM_SPEC = pl.BlockSpec(memory_space=pltpu.MemorySpace.VMEM)


def fused_forward(x_pad_bf16, w_pad_bf16):
    b_pad = x_pad_bf16.shape[0]
    return pl.pallas_call(
        _fused_forward_kernel,
        out_shape=jax.ShapeDtypeStruct((b_pad, LANE), jnp.float32),
        in_specs=[_VMEM_SPEC, _VMEM_SPEC],
        out_specs=_VMEM_SPEC,
        compiler_params=pltpu.CompilerParams(vmem_limit_bytes=4 * 1024 * 1024),
    )(x_pad_bf16, w_pad_bf16)

# ----------------------------- TT helpers (weight-prep glue) ------------------

def dense_from_tt(cores, in_modes, out_modes, xp=jnp):
    """Fold TT-matrix cores into the dense (prod(in_modes) x prod(out_modes)) weight."""
    res = cores[0][0]                              # (m1, n1, r1)
    m_acc, n_acc = in_modes[0], out_modes[0]
    for k in range(1, len(cores)):
        core = cores[k]                            # (r, m, n, s)
        res = xp.einsum('abr,rmns->ambns', res.reshape(m_acc, n_acc, -1), core)
        m_acc *= in_modes[k]
        n_acc *= out_modes[k]
        res = res.reshape(m_acc, n_acc, core.shape[3])
    return res.reshape(m_acc, n_acc)


def init_tt_cores(key, in_modes, out_modes, rank):
    d = len(in_modes)
    ranks = [1] + [rank] * (d - 1) + [1]
    keys = jax.random.split(key, d)
    cores = []
    for k in range(d):
        shape = (ranks[k], in_modes[k], out_modes[k], ranks[k + 1])
        scale = 1.0 / math.sqrt(ranks[k] * in_modes[k])
        cores.append(scale * jax.random.normal(keys[k], shape, dtype=jnp.float32))
    return cores

# ----------------------------- model -----------------------------------------

def prepare_weights(cores1, cores2):
    """One-time weight prep (hoisted out of the per-step path).

    Folds TT cores -> dense W1 (32,64) / W2 (64,10), then folds the two linear layers
    into a single W = W1 @ W2 (valid because the reference forward has no nonlinearity
    or bias between ip1 and ip2), pads classes 10 -> 128 lanes, casts to bf16.
    """
    W1 = dense_from_tt(cores1, IN_MODES_1, OUT_MODES_1)             # (32, 64) f32
    W2 = dense_from_tt(cores2, IN_MODES_2, OUT_MODES_2)             # (64, 10) f32
    W = W1 @ W2                                                     # (32, 10) f32
    W_pad = jnp.pad(W, ((0, 0), (0, LANE - NUM_CLASSES)))           # (32, 128)
    return W_pad.astype(jnp.bfloat16)
    # TODO(synk): at original scale W1 (~1.4 GB dense) cannot be folded; keep per-layer
    # TT contractions streamed from HBM instead.


@jax.jit
def model(x, w_pad_bf16):
    B = x.shape[0]
    # Pad batch 2 -> 8 sublanes and features 17 -> 32; zero rows/cols contribute nothing.
    x_pad = jnp.pad(x, ((0, BATCH_PAD - B), (0, M1 - x.shape[1]))).astype(jnp.bfloat16)
    y = fused_forward(x_pad, w_pad_bf16)                            # (8, 128) f32
    # to_dense() is an identity here and torch.squeeze() is a no-op for (2, 10);
    # log_softmax(dim=1) is computed inside the fused kernel.
    # TODO(synk): t3.FTT_Solver may carry a bias term; its definition is unavailable, omitted.
    return y[:B, :NUM_CLASSES]


if __name__ == "__main__":
    key = jax.random.PRNGKey(0)
    k_x, k1, k2 = jax.random.split(key, 3)
    x = jax.random.normal(k_x, (BATCH, IN_FEATURES), dtype=jnp.float32)
    cores1 = init_tt_cores(k1, IN_MODES_1, OUT_MODES_1, TT_RANK)
    cores2 = init_tt_cores(k2, IN_MODES_2, OUT_MODES_2, TT_RANK)

    W_pad = jax.block_until_ready(prepare_weights(cores1, cores2))  # once, outside the step
    out = jax.block_until_ready(model(x, W_pad))
    assert out.shape == (BATCH, NUM_CLASSES)

    # float64 numpy reference for the whole forward pass
    c1_np = [np.asarray(c, dtype=np.float64) for c in cores1]
    c2_np = [np.asarray(c, dtype=np.float64) for c in cores2]
    W1_np = dense_from_tt(c1_np, IN_MODES_1, OUT_MODES_1, xp=np)
    W2_np = dense_from_tt(c2_np, IN_MODES_2, OUT_MODES_2, xp=np)
    x_np = np.zeros((BATCH, M1), dtype=np.float64)
    x_np[:, :IN_FEATURES] = np.asarray(x, dtype=np.float64)
    logits = x_np @ W1_np @ W2_np
    s = logits - logits.max(axis=1, keepdims=True)
    ref = s - np.log(np.exp(s).sum(axis=1, keepdims=True))

    # Tolerance accounts for bf16 matmul operands (f32 accumulation) vs. the f64 reference.
    np.testing.assert_allclose(np.asarray(out), ref, rtol=5e-2, atol=5e-2)

    print("KERNEL_OK")
</pallas_src>

<mosaic_0001>
module attributes {stable_mosaic.version = 11 : i64} {
  func.func @_fused_forward_kernel(%arg0: memref<8x32xbf16, #tpu.memory_space<vmem>>, %arg1: memref<32x128xbf16, #tpu.memory_space<vmem>>, %arg2: memref<8x128xf32, #tpu.memory_space<vmem>>) attributes {dimension_semantics = [], scalar_prefetch = 0 : i64, scratch_operands = 0 : i64, tpu.core_type = #tpu.core_type<tc>} {
    %c0 = arith.constant 0 : index
    %c0_0 = arith.constant 0 : index
    %0 = vector.load %arg0[%c0, %c0_0] : memref<8x32xbf16, #tpu.memory_space<vmem>>, vector<8x32xbf16>
    %c0_1 = arith.constant 0 : index
    %c0_2 = arith.constant 0 : index
    %1 = vector.load %arg1[%c0_1, %c0_2] : memref<32x128xbf16, #tpu.memory_space<vmem>>, vector<32x128xbf16>
    %cst = arith.constant dense<0.000000e+00> : vector<8x128xf32>
    %2 = tpu.matmul %0, %1, %cst {dimension_numbers = #tpu.dot_dimension_numbers<[1], [0], [0], [1], [0, 0, 1, 1], [], []>} : vector<8x32xbf16>, vector<32x128xbf16>, vector<8x128xf32> -> vector<8x128xf32>
    %3 = tpu.iota {dimensions = array<i32: 1>} : vector<8x128xi32>
    %c10_i32 = arith.constant 10 : i32
    %4 = vector.broadcast %c10_i32 : i32 to vector<8x128xi32>
    %5 = arith.cmpi slt, %3, %4 : vector<8x128xi32>
    %cst_3 = arith.constant -1.000000e+30 : f32
    %6 = vector.broadcast %cst_3 : f32 to vector<8x128xf32>
    %7 = arith.select %5, %2, %6 : vector<8x128xi1>, vector<8x128xf32>
    %cst_4 = arith.constant dense<0xFF800000> : vector<8xf32>
    %8 = vector.multi_reduction <maximumf>, %7, %cst_4 [1] : vector<8x128xf32> to vector<8xf32>
    %9 = vector.shape_cast %8 : vector<8xf32> to vector<8x1xf32>
    %10 = vector.broadcast %9 : vector<8x1xf32> to vector<8x128xf32>
    %11 = arith.subf %7, %10 : vector<8x128xf32>
    %12 = math.exp %11 : vector<8x128xf32>
    %cst_5 = arith.constant dense<0.000000e+00> : vector<8xf32>
    %13 = vector.multi_reduction <add>, %12, %cst_5 [1] : vector<8x128xf32> to vector<8xf32>
    %14 = vector.shape_cast %13 : vector<8xf32> to vector<8x1xf32>
    %15 = math.log %14 : vector<8x1xf32>
    %16 = vector.broadcast %15 : vector<8x1xf32> to vector<8x128xf32>
    %17 = arith.subf %11, %16 : vector<8x128xf32>
    %c0_6 = arith.constant 0 : index
    %c0_7 = arith.constant 0 : index
    %18 = vector.load %arg2[%c0_6, %c0_7] : memref<8x128xf32, #tpu.memory_space<vmem>>, vector<8x128xf32>
    tpu.vector_store %arg2[%c0_6, %c0_7], %17 {strides = array<i32>} : memref<8x128xf32, #tpu.memory_space<vmem>>, vector<8x128xf32>,
    return
  }
}

</mosaic_0001>

<bundles_post_ra>
// kernel: model.1
= control target key start
LH: loop header
LB: loop body
LE: loop exit
PB: predicated region body
PF: predicated region fallthrough
CT: control target
= control target key end

     0   :  { %7 = vsyncpa [#allocation3], 0  ;;  %s156_s9 = smov [#allocation2]   ;;  %s194_s0 = inlined_call_operand.vmem [shape: bf16[8,32], index: 0, kind: input, shape index: {}]   ;;  %s195_s1 = inlined_call_operand.hbm [shape: bf16[32,128], index: 1, kind: input, shape index: {}]   ;;  %s196_s2 = inlined_call_operand.vmem [shape: f32[8,128], index: 2, kind: output, shape index: {}]  }
   0x1   :  { %s15_s10 = sshll.u32 %s156_s9, 4  ;;  %s132_s13 = scalar_lea.hbm %s195_s1, 256  ;;  %s16_s10 = int_to_ptr.vmem [resolvable:$true] %s15_s10 }
   0x2   :  { %p133_p0 = scmp.ne.s32.totalorder %s195_s1, %s132_s13  ;;  %p136_p1 = scmp.lt.u32.totalorder %s132_s13, %s195_s1 }
   0x4   :  { %p138_p2 = pnand %p136_p1, %p133_p0 }
   0x6   :  { %141 = shalt.err (!%p138_p2)
}
   0x7   :  { %s142_s18 = scalar_lea.vmem %s16_s10, 256  ;;  %p147_p4 = scmp.lt.s32.totalorder %s16_s10, %s16_s10 }
   0x8   :  { %p143_p3 = scmp.ne.s32.totalorder %s16_s10, %s142_s18  ;;  %p148_p5 = scmp.lt.s32.totalorder %s142_s18, %s142_s18 }
   0xa   :  { %p149_p6 = por %p148_p5, %p147_p4 }
   0xc   :  { %p150_p7 = pnand %p149_p6, %p143_p3 }
   0xe   :  { %153 = shalt.err (!%p150_p7)
}
   0xf   :  { %s157_s19 = smov 64   ;;  %s158_s20 = smov 4  }
  0x10   :  { %21 = dma.hbm_to_vmem [thread:$0]  %s195_s1, 256, %s16_s10, [#allocation3], %s157_s19, %s157_s19, %s158_s20  }
  0x11   :  { %154 = dma.done.wait [#allocation3], 256  }
  0x12   :  { %155 = vsyncadd [#allocation3], 4294967040  ;;  %v159_v0 = vmov 0.0   ;;  %vm160_vm0 = vmmov 0   ;;  %v126_v1 = vld [vmem:[#allocation2] sm:$0xff]   ;;  %v127_v2 = vld [vmem:[#allocation2 + $0x8] sm:$0xff]   ;;  %v87_v4 = vlaneseq }
  0x13   :  { %113 = vmatprep.subr.bf16.mxu0 %v159_v0  ;;  %117 = vmatprep.mubr.msk.bf16.mxu0 %vm160_vm0, %v159_v0  ;;  %v26_v3 = vld [vmem:[%s194_s0] sm:$0xf]  ;;  %vm43_vm1 = vcmask 261120  }
  0x14   :  { %114 = vmatpush3.bf16.msra.mxu0 %v126_v1  ;;  %v88_v5 = vand.u32 127, %v87_v4 }
  0x15   :  { %115 = vmatprep.subr.bf16.mxu0 %v159_v0 }
  0x16   :  { %vm89_vm2 = vcmp.lt.s32.totalorder %v88_v5, 10 }
  0x18   :  { %116 = vmatpush3.bf16.msra.mxu0 %v127_v2 }
  0x1b   :  { %118 = vmatmul.mubr.msk.bf16.vlgmr.msra.gmra.mrb[0].mxu0 %vm43_vm1, %v26_v3 }
  0xee   :  { %v81_v6 = vpop.f32.mrb[0].mxu0 }
  0xef   :  { %v119_v7 = vpop.f32.mrb[1].mxu0  ;;  %v90_v8 = vsel %vm89_vm2, %v81_v6, -1e+30 }
  0xf0   :  { %91 = vmax.xlane.f32.xlu0 %v90_v8  ;;  %v84_v9 = vpop.f32.mrb[2].mxu0 }
  0xf1   :  { %v120_v10 = vpop.f32.mrb[3].mxu0 }
 0x17d   :  { %v92_v11 = vpop.xlane.xlu0 %91 }
 0x17e   :  { %v93_v12 = vsub.f32 %v90_v8, %v92_v11 }
 0x180   :  { %v94_v13 = vmul.f32 1.442695, %v93_v12 }
 0x182   :  { %128 = vpow2.f32 %v94_v13 }
 0x18c   :  { %v129_v14 = vpop.eup %128 }
 0x18d   :  { %96 = vadd.xlane.f32.xlu0 %v129_v14 }
 0x21a   :  { %v97_v15 = vpop.xlane.xlu0 %96 }
 0x21b   :  { %130 = vlog2.f32 %v97_v15 }
 0x225   :  { %v131_v16 = vpop.eup %130 }
 0x226   :  { %v99_v17 = vmul.f32 0.6931472, %v131_v16 }
 0x228   :  { %v100_v18 = vsub.f32 %v93_v12, %v99_v17 }
 0x22a   :  { %101 = vst [vmem:[%s196_s2] sm:$0xff] %v100_v18 }
 0x22b   :  { %106 = vsyncpa [#allocation3], 1 }

</bundles_post_ra>
